<compile_context>
chip_gen: v5e
topology: v5e:2x2
jax: 0.10.0
libtpu: 0.0.40
codegen_flags: <defaults>
</compile_context>

<pallas_src>
import functools
import math
from typing import NamedTuple

import jax
import jax.numpy as jnp
from jax.experimental import pallas as pl
from jax.experimental.pallas import tpu as pltpu

NEG_SLOPE = 0.01   # nn.LeakyReLU default negative_slope
LANE = 128         # TPU lane width
TM_MAX = 2048      # max batch-tile rows (live VMEM per tile is only a few MiB)


def _round_up(x, m):
    return ((x + m - 1) // m) * m


def _leaky_relu(x):
    # slope < 1  =>  leaky_relu(x) == max(x, slope * x)   (one mul + one max)
    return jnp.maximum(x, NEG_SLOPE * x)


# ------------------------------------------------------------------ parameters


class PreparedParams(NamedTuple):
    """Lane-padded, bf16-cast weights. Build once per parameter update."""
    w1: jax.Array   # (S,  Hp) bf16
    b1: jax.Array   # (1,  Hp) f32
    w2: jax.Array   # (Hp, Hp) bf16
    b2: jax.Array   # (1,  Hp) f32
    w3: jax.Array   # (Hp, Ap) bf16
    b3: jax.Array   # (1,  Ap) f32
    dim_action: int


def init_params(key, dim_state, dim_action, dim_hidden=64):
    """Mirrors init_weight: xavier_normal_ weights, zero biases.

    Weights are stored pre-transposed as [in, out] so the kernel computes
    x @ W + b directly on the MXU (xavier std is symmetric in fan_in/fan_out).
    """
    def xavier_normal(k, fan_in, fan_out):
        std = math.sqrt(2.0 / (fan_in + fan_out))
        return std * jax.random.normal(k, (fan_in, fan_out), dtype=jnp.float32)

    k1, k2, k3 = jax.random.split(key, 3)
    w1 = xavier_normal(k1, dim_state, dim_hidden)
    b1 = jnp.zeros((1, dim_hidden), dtype=jnp.float32)
    w2 = xavier_normal(k2, dim_hidden, dim_hidden)
    b2 = jnp.zeros((1, dim_hidden), dtype=jnp.float32)
    w3 = xavier_normal(k3, dim_hidden, dim_action)
    b3 = jnp.zeros((1, dim_action), dtype=jnp.float32)
    return (w1, b1, w2, b2, w3, b3)


def _pad_cols(a, cols):
    pad = cols - a.shape[1]
    return a if pad == 0 else jnp.pad(a, ((0, 0), (0, pad)))


def _pad_rows(a, rows):
    pad = rows - a.shape[0]
    return a if pad == 0 else jnp.pad(a, ((0, pad), (0, 0)))


def prepare_params(params):
    """Pad hidden/action dims to 128-lane width and cast MXU operands to bf16.

    Call ONCE per parameter update and reuse -- do NOT call per forward step
    (keeps the act-selection path to a single pallas_call dispatch).
    Zero padding is exact because LeakyReLU(0) == 0, so padded units never
    contribute to the real outputs.
    """
    w1, b1, w2, b2, w3, b3 = params
    H = w1.shape[1]
    A = w3.shape[1]
    Hp = _round_up(H, LANE)
    Ap = _round_up(A, LANE)
    return PreparedParams(
        w1=_pad_cols(w1, Hp).astype(jnp.bfloat16),
        b1=_pad_cols(b1, Hp).astype(jnp.float32),
        w2=_pad_cols(_pad_rows(w2, Hp), Hp).astype(jnp.bfloat16),
        b2=_pad_cols(b2, Hp).astype(jnp.float32),
        w3=_pad_cols(_pad_rows(w3, Hp), Ap).astype(jnp.bfloat16),
        b3=_pad_cols(b3, Ap).astype(jnp.float32),
        dim_action=A,
    )


# --------------------------------------------------------------------- kernels


def _mlp_block(x_ref, w1_ref, b1_ref, w2_ref, b2_ref, w3_ref, b3_ref):
    """Fused forward for one [TM, S] tile; returns f32 [TM, Ap] padded q block."""
    # In-kernel bf16 cast of states: free VPU filler under the MXU; keeps HBM
    # traffic for the only batch-scaled input at a single f32 read.
    x = x_ref[...].astype(jnp.bfloat16)                                 # (TM, S)
    h1 = jnp.dot(x, w1_ref[...], preferred_element_type=jnp.float32) + b1_ref[...]
    h1 = _leaky_relu(h1)                                                # f32 (TM, Hp)
    h2 = jnp.dot(h1.astype(jnp.bfloat16), w2_ref[...],
                 preferred_element_type=jnp.float32) + b2_ref[...]
    h2 = _leaky_relu(h2)                                                # f32 (TM, Hp)
    q = jnp.dot(h2.astype(jnp.bfloat16), w3_ref[...],
                preferred_element_type=jnp.float32) + b3_ref[...]
    return q                                                            # f32 (TM, Ap)


def qnet_forward_kernel(x_ref, w1_ref, b1_ref, w2_ref, b2_ref, w3_ref, b3_ref,
                        o_ref, *, dim_action):
    q = _mlp_block(x_ref, w1_ref, b1_ref, w2_ref, b2_ref, w3_ref, b3_ref)
    # Only the real action columns hit HBM; the zero-padded lanes never leave
    # vregs.  (o_ref last dim == full array dim, so the narrow store is legal.)
    o_ref[...] = q[:, :dim_action]


def qnet_action_kernel(x_ref, w1_ref, b1_ref, w2_ref, b2_ref, w3_ref, b3_ref,
                       a_ref, *, dim_action):
    q = _mlp_block(x_ref, w1_ref, b1_ref, w2_ref, b2_ref, w3_ref, b3_ref)  # (TM, Ap)
    col = jax.lax.broadcasted_iota(jnp.int32, q.shape, 1)
    # Mask zero-padded action columns so they can never win the argmax.
    q_m = jnp.where(col < dim_action, q, jnp.float32(-3.0e38))
    m = jnp.max(q_m, axis=1, keepdims=True)
    col_f = col.astype(jnp.float32)
    # First maximal index (matches torch .max(dim=1)[1] / jnp.argmax tie rule).
    idx = jnp.min(jnp.where(q_m >= m, col_f, jnp.float32(q.shape[1])),
                  axis=1, keepdims=True)                                   # (TM, 1)
    # Clamp: if a row is all-NaN the compare above selects nothing; clamping
    # guarantees an in-range action index is always emitted.
    idx = jnp.minimum(idx, jnp.float32(dim_action - 1))
    a_ref[...] = idx.astype(jnp.int32)


# -------------------------------------------------------------------- wrappers


def _in_specs(S, TM, pp: PreparedParams):
    # Weights / biases: index_map -> (0, 0) on every grid step, so they stay
    # VMEM-resident and are DMA'd from HBM only once.
    resident = lambda a: pl.BlockSpec(a.shape, lambda i: (0, 0))
    return [pl.BlockSpec((TM, S), lambda i: (i, 0)),
            resident(pp.w1), resident(pp.b1),
            resident(pp.w2), resident(pp.b2),
            resident(pp.w3), resident(pp.b3)]


def _pick_tile(B, tm_max=TM_MAX):
    """Batch tile: single block for small B; otherwise an even number of
    128-row-aligned tiles so v7x's 2 TensorCores get balanced work."""
    if B <= LANE:
        return B                      # block == full array rows
    pairs = pl.cdiv(pl.cdiv(B, 2), tm_max)          # -> grid of 2*pairs steps
    tm = _round_up(pl.cdiv(B, 2 * pairs), LANE)     # multiple of 128 (and 8)
    return min(tm, tm_max)


# NOTE on partial last tile: Pallas pads the trailing input block with garbage
# rows; they flow through the matmuls but their output rows are clipped on
# writeback, so results are unaffected.  Do NOT turn the output store into an
# accumulate, or the garbage rows would start to matter.


def qnet_forward(states, prepared: PreparedParams, *, tm_max=TM_MAX):
    """states: [B, dim_state] f32 -> q_values: [B, dim_action] f32."""
    B, S = states.shape
    A = prepared.dim_action
    TM = _pick_tile(B, tm_max)
    return pl.pallas_call(
        functools.partial(qnet_forward_kernel, dim_action=A),
        out_shape=jax.ShapeDtypeStruct((B, A), jnp.float32),
        grid=(pl.cdiv(B, TM),),
        in_specs=_in_specs(S, TM, prepared),
        out_specs=pl.BlockSpec((TM, A), lambda i: (i, 0)),
        compiler_params=pltpu.CompilerParams(dimension_semantics=("parallel",)),
    )(states, prepared.w1, prepared.b1, prepared.w2, prepared.b2,
      prepared.w3, prepared.b3)


def qnet_get_action(states, prepared: PreparedParams, *, tm_max=TM_MAX):
    """Equivalent of QNet_dqn.get_action: argmax_a Q(s, a), fused in-kernel."""
    B, S = states.shape
    A = prepared.dim_action
    TM = _pick_tile(B, tm_max)
    actions = pl.pallas_call(
        functools.partial(qnet_action_kernel, dim_action=A),
        out_shape=jax.ShapeDtypeStruct((B, 1), jnp.int32),
        grid=(pl.cdiv(B, TM),),
        in_specs=_in_specs(S, TM, prepared),
        out_specs=pl.BlockSpec((TM, 1), lambda i: (i, 0)),
        compiler_params=pltpu.CompilerParams(dimension_semantics=("parallel",)),
    )(states, prepared.w1, prepared.b1, prepared.w2, prepared.b2,
      prepared.w3, prepared.b3)
    return actions[:, 0]


# ------------------------------------------------------------------ references


def _reference_forward_f32(states, params):
    """Pure-f32 JAX reference matching the PyTorch module semantics."""
    w1, b1, w2, b2, w3, b3 = params
    hi = jax.lax.Precision.HIGHEST
    h1 = _leaky_relu(jnp.dot(states, w1, precision=hi) + b1)
    h2 = _leaky_relu(jnp.dot(h1, w2, precision=hi) + b2)
    return jnp.dot(h2, w3, precision=hi) + b3


def _reference_forward_matched(states, params):
    """Reference reproducing the kernel's bf16-operand / f32-accumulate strategy."""
    w1, b1, w2, b2, w3, b3 = params
    hi = jax.lax.Precision.HIGHEST
    bf = lambda a: a.astype(jnp.bfloat16).astype(jnp.float32)
    h1 = _leaky_relu(jnp.dot(bf(states), bf(w1), precision=hi) + b1)
    h2 = _leaky_relu(jnp.dot(bf(h1), bf(w2), precision=hi) + b2)
    return jnp.dot(bf(h2), bf(w3), precision=hi) + b3


def _check_actions_near_optimal(actions, q_ref, margin=1e-2):
    picked = jnp.take_along_axis(q_ref, actions[:, None].astype(jnp.int32), axis=1)[:, 0]
    return bool(jnp.all(picked >= q_ref.max(axis=1) - margin))


if __name__ == "__main__":
    key = jax.random.PRNGKey(0)
    k_param, k_s1, k_s2 = jax.random.split(key, 3)

    dim_state, dim_action, dim_hidden = 16, 4, 64
    params = init_params(k_param, dim_state, dim_action, dim_hidden)
    prepared = prepare_params(params)   # once per parameter update, reused below

    # --- small batch (single tile, block == full array) ---
    B_small = 8
    states_small = jax.random.normal(k_s1, (B_small, dim_state), dtype=jnp.float32)

    q_small = jax.block_until_ready(qnet_forward(states_small, prepared))
    ref_m_small = _reference_forward_matched(states_small, params)
    ref_f_small = _reference_forward_f32(states_small, params)
    assert q_small.shape == (B_small, dim_action)
    assert jnp.allclose(q_small, ref_m_small, atol=5e-3, rtol=1e-3)
    assert jnp.allclose(q_small, ref_f_small, atol=5e-2, rtol=5e-2)

    actions_small = jax.block_until_ready(qnet_get_action(states_small, prepared))
    assert actions_small.shape == (B_small,)
    assert actions_small.dtype == jnp.int32
    assert _check_actions_near_optimal(actions_small, ref_m_small)

    # --- larger batch: exercises the balanced multi-tile grid + edge clipping ---
    B_big = 3000  # not a multiple of the row tile on purpose (partial last tile)
    states_big = jax.random.normal(k_s2, (B_big, dim_state), dtype=jnp.float32)

    q_big = jax.block_until_ready(qnet_forward(states_big, prepared))
    ref_m_big = _reference_forward_matched(states_big, params)
    assert q_big.shape == (B_big, dim_action)
    assert jnp.allclose(q_big, ref_m_big, atol=5e-3, rtol=1e-3)

    actions_big = jax.block_until_ready(qnet_get_action(states_big, prepared))
    assert actions_big.shape == (B_big,)
    assert _check_actions_near_optimal(actions_big, ref_m_big)

    print("KERNEL_OK")
</pallas_src>

<mosaic_0001>
module attributes {stable_mosaic.version = 11 : i64} {
  func.func @qnet_forward_kernel(%arg0: i32, %arg1: memref<8x16xf32, #tpu.memory_space<vmem>>, %arg2: memref<16x128xbf16, #tpu.memory_space<vmem>>, %arg3: memref<1x128xf32, #tpu.memory_space<vmem>>, %arg4: memref<128x128xbf16, #tpu.memory_space<vmem>>, %arg5: memref<1x128xf32, #tpu.memory_space<vmem>>, %arg6: memref<128x128xbf16, #tpu.memory_space<vmem>>, %arg7: memref<1x128xf32, #tpu.memory_space<vmem>>, %arg8: memref<8x4xf32, #tpu.memory_space<vmem>>) attributes {dimension_semantics = [#tpu.dimension_semantics<parallel>], iteration_bounds = array<i64: 1>, scalar_prefetch = 0 : i64, scratch_operands = 0 : i64, tpu.core_type = #tpu.core_type<tc>, window_params = [{transform_indices = @transform_0, window_bounds = array<i64: 8, 16>}, {pipeline_mode = #tpu.pipeline_mode<synchronous>, transform_indices = @transform_1, window_bounds = array<i64: 16, 128>}, {pipeline_mode = #tpu.pipeline_mode<synchronous>, transform_indices = @transform_2, window_bounds = array<i64: 1, 128>}, {pipeline_mode = #tpu.pipeline_mode<synchronous>, transform_indices = @transform_3, window_bounds = array<i64: 128, 128>}, {pipeline_mode = #tpu.pipeline_mode<synchronous>, transform_indices = @transform_4, window_bounds = array<i64: 1, 128>}, {pipeline_mode = #tpu.pipeline_mode<synchronous>, transform_indices = @transform_5, window_bounds = array<i64: 128, 128>}, {pipeline_mode = #tpu.pipeline_mode<synchronous>, transform_indices = @transform_6, window_bounds = array<i64: 1, 128>}, {transform_indices = @transform_7, window_bounds = array<i64: 8, 4>}]} {
    %c0 = arith.constant 0 : index
    %c0_0 = arith.constant 0 : index
    %0 = vector.load %arg1[%c0, %c0_0] : memref<8x16xf32, #tpu.memory_space<vmem>>, vector<8x16xf32>
    %1 = arith.truncf %0 : vector<8x16xf32> to vector<8x16xbf16>
    %c0_1 = arith.constant 0 : index
    %c0_2 = arith.constant 0 : index
    %2 = vector.load %arg2[%c0_1, %c0_2] : memref<16x128xbf16, #tpu.memory_space<vmem>>, vector<16x128xbf16>
    %cst = arith.constant dense<0.000000e+00> : vector<8x128xf32>
    %3 = tpu.matmul %1, %2, %cst {dimension_numbers = #tpu.dot_dimension_numbers<[1], [0], [0], [1], [0, 0, 1, 1], [], []>} : vector<8x16xbf16>, vector<16x128xbf16>, vector<8x128xf32> -> vector<8x128xf32>
    %c0_3 = arith.constant 0 : index
    %c0_4 = arith.constant 0 : index
    %4 = vector.load %arg3[%c0_3, %c0_4] : memref<1x128xf32, #tpu.memory_space<vmem>>, vector<1x128xf32>
    %5 = vector.broadcast %4 : vector<1x128xf32> to vector<8x128xf32>
    %6 = arith.addf %3, %5 : vector<8x128xf32>
    %cst_5 = arith.constant 0.00999999977 : f32
    %7 = vector.broadcast %cst_5 : f32 to vector<8x128xf32>
    %8 = arith.mulf %7, %6 : vector<8x128xf32>
    %9 = arith.maximumf %6, %8 : vector<8x128xf32>
    %10 = arith.truncf %9 : vector<8x128xf32> to vector<8x128xbf16>
    %c0_6 = arith.constant 0 : index
    %c0_7 = arith.constant 0 : index
    %11 = vector.load %arg4[%c0_6, %c0_7] : memref<128x128xbf16, #tpu.memory_space<vmem>>, vector<128x128xbf16>
    %cst_8 = arith.constant dense<0.000000e+00> : vector<8x128xf32>
    %12 = tpu.matmul %10, %11, %cst_8 {dimension_numbers = #tpu.dot_dimension_numbers<[1], [0], [0], [1], [0, 0, 1, 1], [], []>} : vector<8x128xbf16>, vector<128x128xbf16>, vector<8x128xf32> -> vector<8x128xf32>
    %c0_9 = arith.constant 0 : index
    %c0_10 = arith.constant 0 : index
    %13 = vector.load %arg5[%c0_9, %c0_10] : memref<1x128xf32, #tpu.memory_space<vmem>>, vector<1x128xf32>
    %14 = vector.broadcast %13 : vector<1x128xf32> to vector<8x128xf32>
    %15 = arith.addf %12, %14 : vector<8x128xf32>
    %cst_11 = arith.constant 0.00999999977 : f32
    %16 = vector.broadcast %cst_11 : f32 to vector<8x128xf32>
    %17 = arith.mulf %16, %15 : vector<8x128xf32>
    %18 = arith.maximumf %15, %17 : vector<8x128xf32>
    %19 = arith.truncf %18 : vector<8x128xf32> to vector<8x128xbf16>
    %c0_12 = arith.constant 0 : index
    %c0_13 = arith.constant 0 : index
    %20 = vector.load %arg6[%c0_12, %c0_13] : memref<128x128xbf16, #tpu.memory_space<vmem>>, vector<128x128xbf16>
    %cst_14 = arith.constant dense<0.000000e+00> : vector<8x128xf32>
    %21 = tpu.matmul %19, %20, %cst_14 {dimension_numbers = #tpu.dot_dimension_numbers<[1], [0], [0], [1], [0, 0, 1, 1], [], []>} : vector<8x128xbf16>, vector<128x128xbf16>, vector<8x128xf32> -> vector<8x128xf32>
    %c0_15 = arith.constant 0 : index
    %c0_16 = arith.constant 0 : index
    %22 = vector.load %arg7[%c0_15, %c0_16] : memref<1x128xf32, #tpu.memory_space<vmem>>, vector<1x128xf32>
    %23 = vector.broadcast %22 : vector<1x128xf32> to vector<8x128xf32>
    %24 = arith.addf %21, %23 : vector<8x128xf32>
    %25 = vector.extract_strided_slice %24 {offsets = [0, 0], sizes = [8, 4], strides = [1, 1]} : vector<8x128xf32> to vector<8x4xf32>
    %c0_17 = arith.constant 0 : index
    %c0_18 = arith.constant 0 : index
    %26 = vector.load %arg8[%c0_17, %c0_18] : memref<8x4xf32, #tpu.memory_space<vmem>>, vector<8x4xf32>
    tpu.vector_store %arg8[%c0_17, %c0_18], %25 {strides = array<i32>} : memref<8x4xf32, #tpu.memory_space<vmem>>, vector<8x4xf32>,
    return
  }
  func.func @transform_0(%arg0: i32) -> (i32, i32) {
    %c0_i32 = arith.constant 0 : i32
    %c0_i32_0 = arith.constant 0 : i32
    return %arg0, %c0_i32 : i32, i32
  }
  func.func @transform_1(%arg0: i32) -> (i32, i32) {
    %c0_i32 = arith.constant 0 : i32
    %c0_i32_0 = arith.constant 0 : i32
    %c0_i32_1 = arith.constant 0 : i32
    return %c0_i32, %c0_i32_0 : i32, i32
  }
  func.func @transform_2(%arg0: i32) -> (i32, i32) {
    %c0_i32 = arith.constant 0 : i32
    %c0_i32_0 = arith.constant 0 : i32
    %c0_i32_1 = arith.constant 0 : i32
    return %c0_i32, %c0_i32_0 : i32, i32
  }
  func.func @transform_3(%arg0: i32) -> (i32, i32) {
    %c0_i32 = arith.constant 0 : i32
    %c0_i32_0 = arith.constant 0 : i32
    %c0_i32_1 = arith.constant 0 : i32
    return %c0_i32, %c0_i32_0 : i32, i32
  }
  func.func @transform_4(%arg0: i32) -> (i32, i32) {
    %c0_i32 = arith.constant 0 : i32
    %c0_i32_0 = arith.constant 0 : i32
    %c0_i32_1 = arith.constant 0 : i32
    return %c0_i32, %c0_i32_0 : i32, i32
  }
  func.func @transform_5(%arg0: i32) -> (i32, i32) {
    %c0_i32 = arith.constant 0 : i32
    %c0_i32_0 = arith.constant 0 : i32
    %c0_i32_1 = arith.constant 0 : i32
    return %c0_i32, %c0_i32_0 : i32, i32
  }
  func.func @transform_6(%arg0: i32) -> (i32, i32) {
    %c0_i32 = arith.constant 0 : i32
    %c0_i32_0 = arith.constant 0 : i32
    %c0_i32_1 = arith.constant 0 : i32
    return %c0_i32, %c0_i32_0 : i32, i32
  }
  func.func @transform_7(%arg0: i32) -> (i32, i32) {
    %c0_i32 = arith.constant 0 : i32
    %c0_i32_0 = arith.constant 0 : i32
    return %arg0, %c0_i32 : i32, i32
  }
}

</mosaic_0001>

<bundles_post_ra>
// kernel: tpu_custom_call.1
= control target key start
LH: loop header
LB: loop body
LE: loop exit
PB: predicated region body
PF: predicated region fallthrough
CT: control target
= control target key end

     0   :  { %12 = vsyncpa [#allocation3], 0  ;;  %s563_s0 = inlined_call_operand.hbm [shape: f32[8,16], index: 0, kind: input, shape index: {}]   ;;  %s564_s1 = inlined_call_operand.hbm [shape: bf16[16,128], index: 1, kind: input, shape index: {}]   ;;  %s565_s2 = inlined_call_operand.vmem [shape: f32[1,128], index: 2, kind: input, shape index: {}]   ;;  %s566_s3 = inlined_call_operand.hbm [shape: bf16[128,128], index: 3, kind: input, shape index: {}]   ;;  %s567_s4 = inlined_call_operand.vmem [shape: f32[1,128], index: 4, kind: input, shape index: {}]   ;;  %s568_s5 = inlined_call_operand.hbm [shape: bf16[128,128], index: 5, kind: input, shape index: {}]   ;;  %s569_s6 = inlined_call_operand.vmem [shape: f32[1,128], index: 6, kind: input, shape index: {}]   ;;  %s570_s7 = inlined_call_operand.vmem [shape: f32[8,4], index: 7, kind: output, shape index: {}]  }
   0x1   :  { %13 = vsyncpa [#allocation5], 0  ;;  %s30_s26 = sshll.u32 %s564_s1, 4  ;;  %s31_s26 = int_to_ptr.hbm [resolvable:$true] %s30_s26 }
   0x2   :  { %14 = vsyncpa [#allocation8], 0  ;;  %s493_s27 = smov [#allocation4]   ;;  %s20_s8 = sshll.u32 %s563_s0, 4  ;;  %s21_s8 = int_to_ptr.hbm [resolvable:$true] %s20_s8 }
   0x3   :  { %s32_s28 = sshll.u32 %s493_s27, 4  ;;  %s494_s9 = smov 64   ;;  %s33_s28 = int_to_ptr.vmem [resolvable:$true] %s32_s28 }
   0x4   :  { %s495_s10 = smov 4   ;;  %s496_s11 = smov [#allocation2]  }
   0x5   :  { %38 = dma.hbm_to_vmem [thread:$0]  %s31_s26, 128, %s33_s28, [#allocation5], %s494_s9, %s494_s9, %s495_s10  }
   0x6   :  { %s22_s12 = sshll.u32 %s496_s11, 4  ;;  %s45_s15 = sshll.u32 %s566_s3, 4  ;;  %s23_s12 = int_to_ptr.vmem [resolvable:$true] %s22_s12  ;;  %s46_s15 = int_to_ptr.hbm [resolvable:$true] %s45_s15 }
   0x7   :  { %25 = dma.hbm_to_vmem [thread:$0]  %s21_s8, 128, %s23_s12, [#allocation3]  }
   0x8   :  { %s60_s17 = sshll.u32 %s568_s5, 4  ;;  %s497_s18 = smov [#allocation6]   ;;  %s61_s17 = int_to_ptr.hbm [resolvable:$true] %s60_s17 }
   0x9   :  { %s47_s19 = sshll.u32 %s497_s18, 4  ;;  %s498_s0 = smov [#allocation7]   ;;  %s48_s19 = int_to_ptr.vmem [resolvable:$true] %s47_s19 }
   0xa   :  { %53 = dma.hbm_to_vmem [thread:$0]  %s46_s15, 1024, %s48_s19, [#allocation5], %s494_s9, %s494_s9, %s495_s10  }
   0xb   :  { %s62_s20 = sshll.u32 %s498_s0, 4  ;;  %s63_s20 = int_to_ptr.vmem [resolvable:$true] %s62_s20 }
   0xc   :  { %68 = dma.hbm_to_vmem [thread:$0]  %s61_s17, 1024, %s63_s20, [#allocation8], %s494_s9, %s494_s9, %s495_s10  }
   0xd   :  { %487 = dma.done.wait [#allocation3], 128  }
   0xe   :  { %488 = vsyncadd [#allocation3], 4294967168 }
   0xf   :  { %489 = dma.done.wait [#allocation5], 1152  }
  0x10   :  { %490 = vsyncadd [#allocation5], 4294966144 }
  0x11   :  { %491 = dma.done.wait [#allocation8], 1024  }
  0x12   :  { %492 = vsyncadd [#allocation8], 4294966272  ;;  %v365_v0 = vld [vmem:[#allocation4] sm:$0xff]  ;;  %v88_v1 = vld [vmem:[#allocation2] sm:$0xff]  ;;  %vm102_vm0 = vcmask 130048   ;;  %vm287_vm1 = vcmask 31744  }
  0x13   :  { %v373_v2 = vld [vmem:[#allocation6 + $0x38] sm:$0xff]  ;;  %v89_v3 = vpack.c.bf16 %v88_v1, %v88_v1  ;;  %113 = vmatpush.bf16.msra.mxu0 %v365_v0  ;;  %v372_v4 = vld [vmem:[#allocation6 + $0x30] sm:$0xff]  ;;  %v371_v5 = vld [vmem:[#allocation6 + $0x28] sm:$0xff] }
  0x14   :  { %190 = vmatpush.bf16.msra.mxu1 %v373_v2  ;;  %v370_v6 = vld [vmem:[#allocation6 + $0x20] sm:$0xff]  ;;  %v369_v7 = vld [vmem:[#allocation6 + $0x18] sm:$0xff]  ;;  %v368_v8 = vld [vmem:[#allocation6 + $0x10] sm:$0xff] }
  0x15   :  { %v367_v9 = vld [vmem:[#allocation6 + $0x8] sm:$0xff]  ;;  %v366_v10 = vld [vmem:[#allocation6] sm:$0xff]  ;;  %v381_v11 = vld [vmem:[#allocation7 + $0x38] sm:$0xff] }
  0x16   :  { %300 = vmatmul.msk.bf16.vlgmr.msra.gmra.mxu0 %vm102_vm0, %v89_v3  ;;  %274 = vmatpush.bf16.msra.mxu2 %v381_v11  ;;  %v380_v12 = vld [vmem:[#allocation7 + $0x30] sm:$0xff]  ;;  %v379_v13 = vld [vmem:[#allocation7 + $0x28] sm:$0xff]  ;;  %v378_v14 = vld [vmem:[#allocation7 + $0x20] sm:$0xff] }
  0x17   :  { %v377_v15 = vld [vmem:[#allocation7 + $0x18] sm:$0xff]  ;;  %v376_v16 = vld [vmem:[#allocation7 + $0x10] sm:$0xff]  ;;  %v375_v24 = vld [vmem:[#allocation7 + $0x8] sm:$0xff] }
  0x18   :  { %191 = vmatpush.bf16.msra.mxu1 %v372_v4  ;;  %v388_v17 = vld [vmem:[%s565_s2] ss:$0 sm:$0xff]  ;;  %v374_v25 = vld [vmem:[#allocation7] sm:$0xff] }
  0x19   :  { %v389_v26 = vld [vmem:[%s567_s4] ss:$0 sm:$0xff] }
  0x1a   :  { %275 = vmatpush.bf16.msra.mxu2 %v380_v12  ;;  %v390_v33 = vld [vmem:[%s569_s6] ss:$0 sm:$0xff] }
  0x1c   :  { %192 = vmatpush.bf16.msra.mxu1 %v371_v5 }
  0x1e   :  { %276 = vmatpush.bf16.msra.mxu2 %v379_v13 }
  0x20   :  { %193 = vmatpush.bf16.msra.mxu1 %v370_v6 }
  0x22   :  { %277 = vmatpush.bf16.msra.mxu2 %v378_v14 }
  0x24   :  { %194 = vmatpush.bf16.msra.mxu1 %v369_v7 }
  0x26   :  { %278 = vmatpush.bf16.msra.mxu2 %v377_v15 }
  0x28   :  { %195 = vmatpush.bf16.msra.mxu1 %v368_v8 }
  0x2a   :  { %279 = vmatpush.bf16.msra.mxu2 %v376_v16 }
  0x2c   :  { %196 = vmatpush.bf16.msra.mxu1 %v367_v9 }
  0x2e   :  { %280 = vmatpush.bf16.msra.mxu2 %v375_v24 }
  0x30   :  { %197 = vmatpush.bf16.msra.mxu1 %v366_v10 }
  0x32   :  { %281 = vmatpush.bf16.msra.mxu2 %v374_v25 }
  0x93   :  { %v115_v18 = vpop.f32.mrf.mxu0 }
  0x94   :  { %v116_v19 = vadd.f32 %v388_v17, %v115_v18 }
  0x96   :  { %v119_v20 = vmul.f32 0.01, %v116_v19 }
  0x98   :  { %v120_v21 = vmax.f32 %v116_v19, %v119_v20 }
  0x9a   :  { %v121_v22 = vpack.c.bf16 %v120_v21, %v120_v21 }
  0x9b   :  { %v117_v23 = vpop.f32.mrf.mxu0 }
  0x9c   :  { %198 = vmatmul.bf16.vlgmr.msra.gmra.mxu1 %v121_v22 }
 0x119   :  { %v199_v27 = vpop.f32.mrf.mxu1 }
 0x11a   :  { %v200_v28 = vadd.f32 %v389_v26, %v199_v27 }
 0x11c   :  { %v203_v29 = vmul.f32 0.01, %v200_v28 }
 0x11e   :  { %v204_v30 = vmax.f32 %v200_v28, %v203_v29 }
 0x120   :  { %v205_v31 = vpack.c.bf16 %v204_v30, %v204_v30 }
 0x121   :  { %v201_v32 = vpop.f32.mrf.mxu1 }
 0x122   :  { %282 = vmatmul.bf16.vlgmr.msra.gmra.mxu2 %v205_v31 }
 0x1a5   :  { %v283_v34 = vpop.f32.mrf.mxu2 }
 0x1a6   :  { %v284_v35 = vadd.f32 %v390_v33, %v283_v34 }
 0x1a8   :  { %288 = vst.msk [vmem:[%s570_s7] sm:$0xff] %vm287_vm1, %v284_v35 }
 0x1ad   :  { %v285_v36 = vpop.f32.mrf.mxu2 }
 0x1ae   :  { %293 = vsyncpa [#allocation3], 1 }
 0x1af   :  { %294 = vsyncpa [#allocation5], 1 }
 0x1b0   :  { %295 = vsyncpa [#allocation8], 1 }

</bundles_post_ra>
